<compile_context>
chip_gen: v5e
topology: v5e:2x2
jax: 0.10.0
libtpu: 0.0.40
codegen_flags: <defaults>
</compile_context>

<pallas_src>
import functools

import jax
import jax.numpy as jnp
from jax.experimental import pallas as pl
from jax.experimental.pallas import tpu as pltpu


def _round_up(x, m):
    return ((x + m - 1) // m) * m


def net_kernel(x_ref, w1_ref, b1_ref, w2_ref, b2_ref, w3_ref, b3_ref,
               w4_ref, b4_ref, out_ref):
    # x_ref: (TB, in_dim) f32 tile; weights bf16 (lane-padded); biases f32; out_ref: (TB, C) f32
    x = x_ref[...].astype(jnp.bfloat16)   # in-kernel cast: no separate HBM pass over x

    # fc1 + ReLU  (bf16 MXU inputs, f32 accumulate)
    h = jnp.dot(x, w1_ref[...], preferred_element_type=jnp.float32) + b1_ref[...]
    h = jnp.maximum(h, 0.0)

    # fc2 + ReLU
    h = jnp.dot(h.astype(jnp.bfloat16), w2_ref[...],
                preferred_element_type=jnp.float32) + b2_ref[...]
    h = jnp.maximum(h, 0.0)

    # fc3 + Sigmoid  (ReLU after sigmoid is a no-op: sigmoid output is in (0,1)).
    # sigmoid(x) = 0.5*(tanh(x/2)+1) -> tanh lowers to the otherwise-idle EUP slot.
    h = jnp.dot(h.astype(jnp.bfloat16), w3_ref[...],
                preferred_element_type=jnp.float32) + b3_ref[...]
    h = 0.5 * (jnp.tanh(0.5 * h) + 1.0)

    # fc4 (logits). Padded hidden rows of w4 are zero, so the sigmoid(0)=0.5 values coming from
    # padded fc3 columns contribute exactly 0.
    out = jnp.dot(h.astype(jnp.bfloat16), w4_ref[...],
                  preferred_element_type=jnp.float32) + b4_ref[...]
    out_ref[...] = out.astype(out_ref.dtype)


def prepare_params(params):
    """One-time device-side prep (hoisted out of the jitted forward):
    lane-pad hidden dims to multiples of 128 with zeros (numerically exact) and cast
    weights to bf16 for the MXU; biases stay f32 (added to the f32 accumulator)."""
    in_dim, h1 = params["w1"].shape
    h2 = params["w2"].shape[1]
    num_classes = params["w4"].shape[1]
    h1p = _round_up(h1, 128)
    h2p = _round_up(h2, 128)

    def pad2(a, rows, cols):
        return jnp.zeros((rows, cols), a.dtype).at[:a.shape[0], :a.shape[1]].set(a)

    bf = jnp.bfloat16
    prepped = {
        "w1": pad2(params["w1"], in_dim, h1p).astype(bf),
        "b1": pad2(params["b1"], 1, h1p).astype(jnp.float32),
        "w2": pad2(params["w2"], h1p, h2p).astype(bf),
        "b2": pad2(params["b2"], 1, h2p).astype(jnp.float32),
        "w3": pad2(params["w3"], h2p, h1p).astype(bf),
        "b3": pad2(params["b3"], 1, h1p).astype(jnp.float32),
        "w4": pad2(params["w4"], h1p, num_classes).astype(bf),
        "b4": params["b4"].astype(jnp.float32),
    }
    return prepped


@functools.partial(jax.jit, static_argnames=("block_batch",))
def net_forward(x, prepped, *, block_batch=2048):
    """x: [B, input_size] float32. prepped: output of prepare_params (bf16, lane-padded)."""
    B, in_dim = x.shape
    h1p = prepped["w1"].shape[1]
    h2p = prepped["w2"].shape[1]
    num_classes = prepped["w4"].shape[1]

    # --- batch tiling ----------------------------------------------------------------
    # Big tiles amortize the ~600-cycle per-grid-step overhead; >=2 steps for large B so
    # the "parallel" axis shards across both TCs on v7x. TB is a multiple of 16 (bf16 pack).
    n_tiles = max(pl.cdiv(B, block_batch), 2 if B >= 256 else 1)
    TB = _round_up(pl.cdiv(B, n_tiles), 16)
    n_tiles = pl.cdiv(B, TB)
    B_pad = n_tiles * TB

    xb = x
    if B_pad != B:
        xb = jnp.pad(x, ((0, B_pad - B), (0, 0)))
    grid = (n_tiles,)

    full_spec = lambda a: pl.BlockSpec(a.shape, lambda i: (0,) * a.ndim)  # VMEM-resident

    in_specs = [
        pl.BlockSpec((TB, in_dim), lambda i: (i, 0)),   # x tile, streamed & double-buffered
        full_spec(prepped["w1"]), full_spec(prepped["b1"]),
        full_spec(prepped["w2"]), full_spec(prepped["b2"]),
        full_spec(prepped["w3"]), full_spec(prepped["b3"]),
        full_spec(prepped["w4"]), full_spec(prepped["b4"]),
    ]
    # Narrow output (last dim == full array dim): 16x less HBM write traffic than 128-padded f32.
    out_specs = pl.BlockSpec((TB, num_classes), lambda i: (i, 0))

    operands = (xb, prepped["w1"], prepped["b1"], prepped["w2"], prepped["b2"],
                prepped["w3"], prepped["b3"], prepped["w4"], prepped["b4"])

    # Scheduling hint for XLA around the custom call.
    flops = 2 * B_pad * (in_dim * h1p + h1p * h2p + h2p * h1p + h1p * num_classes)
    transcendentals = B_pad * h1p  # tanh (sigmoid) over fc3 output
    bytes_accessed = (sum(int(a.size) * a.dtype.itemsize for a in operands)
                      + B_pad * num_classes * 4)
    cost = pl.CostEstimate(flops=flops, transcendentals=transcendentals,
                           bytes_accessed=bytes_accessed)

    out = pl.pallas_call(
        net_kernel,
        out_shape=jax.ShapeDtypeStruct((B_pad, num_classes), jnp.float32),
        grid=grid,
        in_specs=in_specs,
        out_specs=out_specs,
        compiler_params=pltpu.CompilerParams(
            dimension_semantics=("parallel",)),   # 2-TC sharding on v7x
        cost_estimate=cost,
    )(*operands)

    return out[:B]


def init_params(key, input_size, hidden_size1, hidden_size2, num_classes):
    """Deterministic init matching nn.Linear shapes (stored transposed: [in, out])."""
    dims = [(input_size, hidden_size1),
            (hidden_size1, hidden_size2),
            (hidden_size2, hidden_size1),
            (hidden_size1, num_classes)]
    params = {}
    keys = jax.random.split(key, 2 * len(dims))
    for i, (fan_in, fan_out) in enumerate(dims):
        bound = 1.0 / (fan_in ** 0.5)
        params[f"w{i+1}"] = jax.random.uniform(
            keys[2 * i], (fan_in, fan_out), jnp.float32, -bound, bound)
        params[f"b{i+1}"] = jax.random.uniform(
            keys[2 * i + 1], (1, fan_out), jnp.float32, -bound, bound)
    return params


def reference_forward(x, p):
    h = jnp.maximum(x @ p["w1"] + p["b1"], 0.0)
    h = jnp.maximum(h @ p["w2"] + p["b2"], 0.0)
    h = jnp.maximum(jax.nn.sigmoid(h @ p["w3"] + p["b3"]), 0.0)
    return h @ p["w4"] + p["b4"]


if __name__ == "__main__":
    input_size, hidden_size1, hidden_size2, num_classes = 32, 64, 48, 8
    batch = 20  # not a multiple of the tile -> exercises the batch-padding path

    key = jax.random.PRNGKey(0)
    kx, kp = jax.random.split(key)
    x = jax.random.normal(kx, (batch, input_size), jnp.float32)
    params = init_params(kp, input_size, hidden_size1, hidden_size2, num_classes)

    # one-time weight prep (bf16 cast + lane padding), done outside the jitted forward
    prepped = jax.tree_util.tree_map(jax.block_until_ready, prepare_params(params))

    # small tile so the test exercises multiple grid steps (B=20 -> TB=16, grid=(2,), pad to 32)
    out = net_forward(x, prepped, block_batch=8)
    jax.block_until_ready(out)

    ref = reference_forward(x, params)
    assert out.shape == (batch, num_classes)
    # bf16 MXU inputs with f32 accumulation: validate with a correspondingly looser tolerance
    assert jnp.allclose(out, ref, atol=5e-2, rtol=5e-2), \
        f"max abs err {jnp.max(jnp.abs(out - ref))}"

    print("KERNEL_OK")
</pallas_src>

<mosaic_0001>
module attributes {stable_mosaic.version = 11 : i64} {
  func.func @net_kernel(%arg0: i32, %arg1: memref<16x32xf32, #tpu.memory_space<vmem>>, %arg2: memref<32x128xbf16, #tpu.memory_space<vmem>>, %arg3: memref<1x128xf32, #tpu.memory_space<vmem>>, %arg4: memref<128x128xbf16, #tpu.memory_space<vmem>>, %arg5: memref<1x128xf32, #tpu.memory_space<vmem>>, %arg6: memref<128x128xbf16, #tpu.memory_space<vmem>>, %arg7: memref<1x128xf32, #tpu.memory_space<vmem>>, %arg8: memref<128x8xbf16, #tpu.memory_space<vmem>>, %arg9: memref<1x8xf32, #tpu.memory_space<vmem>>, %arg10: memref<16x8xf32, #tpu.memory_space<vmem>>) attributes {dimension_semantics = [#tpu.dimension_semantics<parallel>], iteration_bounds = array<i64: 2>, scalar_prefetch = 0 : i64, scratch_operands = 0 : i64, tpu.core_type = #tpu.core_type<tc>, window_params = [{transform_indices = @transform_0, window_bounds = array<i64: 16, 32>}, {pipeline_mode = #tpu.pipeline_mode<synchronous>, transform_indices = @transform_1, window_bounds = array<i64: 32, 128>}, {pipeline_mode = #tpu.pipeline_mode<synchronous>, transform_indices = @transform_2, window_bounds = array<i64: 1, 128>}, {pipeline_mode = #tpu.pipeline_mode<synchronous>, transform_indices = @transform_3, window_bounds = array<i64: 128, 128>}, {pipeline_mode = #tpu.pipeline_mode<synchronous>, transform_indices = @transform_4, window_bounds = array<i64: 1, 128>}, {pipeline_mode = #tpu.pipeline_mode<synchronous>, transform_indices = @transform_5, window_bounds = array<i64: 128, 128>}, {pipeline_mode = #tpu.pipeline_mode<synchronous>, transform_indices = @transform_6, window_bounds = array<i64: 1, 128>}, {pipeline_mode = #tpu.pipeline_mode<synchronous>, transform_indices = @transform_7, window_bounds = array<i64: 128, 8>}, {pipeline_mode = #tpu.pipeline_mode<synchronous>, transform_indices = @transform_8, window_bounds = array<i64: 1, 8>}, {transform_indices = @transform_9, window_bounds = array<i64: 16, 8>}]} {
    %c0 = arith.constant 0 : index
    %c0_0 = arith.constant 0 : index
    %0 = vector.load %arg1[%c0, %c0_0] : memref<16x32xf32, #tpu.memory_space<vmem>>, vector<16x32xf32>
    %1 = arith.truncf %0 : vector<16x32xf32> to vector<16x32xbf16>
    %c0_1 = arith.constant 0 : index
    %c0_2 = arith.constant 0 : index
    %2 = vector.load %arg2[%c0_1, %c0_2] : memref<32x128xbf16, #tpu.memory_space<vmem>>, vector<32x128xbf16>
    %cst = arith.constant dense<0.000000e+00> : vector<16x128xf32>
    %3 = tpu.matmul %1, %2, %cst {dimension_numbers = #tpu.dot_dimension_numbers<[1], [0], [0], [1], [0, 0, 1, 1], [], []>} : vector<16x32xbf16>, vector<32x128xbf16>, vector<16x128xf32> -> vector<16x128xf32>
    %c0_3 = arith.constant 0 : index
    %c0_4 = arith.constant 0 : index
    %4 = vector.load %arg3[%c0_3, %c0_4] : memref<1x128xf32, #tpu.memory_space<vmem>>, vector<1x128xf32>
    %5 = vector.broadcast %4 : vector<1x128xf32> to vector<16x128xf32>
    %6 = arith.addf %3, %5 : vector<16x128xf32>
    %cst_5 = arith.constant 0.000000e+00 : f32
    %7 = vector.broadcast %cst_5 : f32 to vector<16x128xf32>
    %8 = arith.maximumf %6, %7 : vector<16x128xf32>
    %9 = arith.truncf %8 : vector<16x128xf32> to vector<16x128xbf16>
    %c0_6 = arith.constant 0 : index
    %c0_7 = arith.constant 0 : index
    %10 = vector.load %arg4[%c0_6, %c0_7] : memref<128x128xbf16, #tpu.memory_space<vmem>>, vector<128x128xbf16>
    %cst_8 = arith.constant dense<0.000000e+00> : vector<16x128xf32>
    %11 = tpu.matmul %9, %10, %cst_8 {dimension_numbers = #tpu.dot_dimension_numbers<[1], [0], [0], [1], [0, 0, 1, 1], [], []>} : vector<16x128xbf16>, vector<128x128xbf16>, vector<16x128xf32> -> vector<16x128xf32>
    %c0_9 = arith.constant 0 : index
    %c0_10 = arith.constant 0 : index
    %12 = vector.load %arg5[%c0_9, %c0_10] : memref<1x128xf32, #tpu.memory_space<vmem>>, vector<1x128xf32>
    %13 = vector.broadcast %12 : vector<1x128xf32> to vector<16x128xf32>
    %14 = arith.addf %11, %13 : vector<16x128xf32>
    %cst_11 = arith.constant 0.000000e+00 : f32
    %15 = vector.broadcast %cst_11 : f32 to vector<16x128xf32>
    %16 = arith.maximumf %14, %15 : vector<16x128xf32>
    %17 = arith.truncf %16 : vector<16x128xf32> to vector<16x128xbf16>
    %c0_12 = arith.constant 0 : index
    %c0_13 = arith.constant 0 : index
    %18 = vector.load %arg6[%c0_12, %c0_13] : memref<128x128xbf16, #tpu.memory_space<vmem>>, vector<128x128xbf16>
    %cst_14 = arith.constant dense<0.000000e+00> : vector<16x128xf32>
    %19 = tpu.matmul %17, %18, %cst_14 {dimension_numbers = #tpu.dot_dimension_numbers<[1], [0], [0], [1], [0, 0, 1, 1], [], []>} : vector<16x128xbf16>, vector<128x128xbf16>, vector<16x128xf32> -> vector<16x128xf32>
    %c0_15 = arith.constant 0 : index
    %c0_16 = arith.constant 0 : index
    %20 = vector.load %arg7[%c0_15, %c0_16] : memref<1x128xf32, #tpu.memory_space<vmem>>, vector<1x128xf32>
    %21 = vector.broadcast %20 : vector<1x128xf32> to vector<16x128xf32>
    %22 = arith.addf %19, %21 : vector<16x128xf32>
    %cst_17 = arith.constant 5.000000e-01 : f32
    %23 = vector.broadcast %cst_17 : f32 to vector<16x128xf32>
    %24 = arith.mulf %23, %22 : vector<16x128xf32>
    %25 = math.tanh %24 : vector<16x128xf32>
    %cst_18 = arith.constant 1.000000e+00 : f32
    %26 = vector.broadcast %cst_18 : f32 to vector<16x128xf32>
    %27 = arith.addf %25, %26 : vector<16x128xf32>
    %cst_19 = arith.constant 5.000000e-01 : f32
    %28 = vector.broadcast %cst_19 : f32 to vector<16x128xf32>
    %29 = arith.mulf %28, %27 : vector<16x128xf32>
    %30 = arith.truncf %29 : vector<16x128xf32> to vector<16x128xbf16>
    %c0_20 = arith.constant 0 : index
    %c0_21 = arith.constant 0 : index
    %31 = vector.load %arg8[%c0_20, %c0_21] : memref<128x8xbf16, #tpu.memory_space<vmem>>, vector<128x8xbf16>
    %cst_22 = arith.constant dense<0.000000e+00> : vector<16x8xf32>
    %32 = tpu.matmul %30, %31, %cst_22 {dimension_numbers = #tpu.dot_dimension_numbers<[1], [0], [0], [1], [0, 0, 1, 1], [], []>} : vector<16x128xbf16>, vector<128x8xbf16>, vector<16x8xf32> -> vector<16x8xf32>
    %c0_23 = arith.constant 0 : index
    %c0_24 = arith.constant 0 : index
    %33 = vector.load %arg9[%c0_23, %c0_24] : memref<1x8xf32, #tpu.memory_space<vmem>>, vector<1x8xf32>
    %34 = vector.broadcast %33 : vector<1x8xf32> to vector<16x8xf32>
    %35 = arith.addf %32, %34 : vector<16x8xf32>
    %c0_25 = arith.constant 0 : index
    %c0_26 = arith.constant 0 : index
    %36 = vector.load %arg10[%c0_25, %c0_26] : memref<16x8xf32, #tpu.memory_space<vmem>>, vector<16x8xf32>
    tpu.vector_store %arg10[%c0_25, %c0_26], %35 {strides = array<i32>} : memref<16x8xf32, #tpu.memory_space<vmem>>, vector<16x8xf32>,
    return
  }
  func.func @transform_0(%arg0: i32) -> (i32, i32) {
    %c0_i32 = arith.constant 0 : i32
    %c0_i32_0 = arith.constant 0 : i32
    return %arg0, %c0_i32 : i32, i32
  }
  func.func @transform_1(%arg0: i32) -> (i32, i32) {
    %c0_i32 = arith.constant 0 : i32
    %c0_i32_0 = arith.constant 0 : i32
    %c0_i32_1 = arith.constant 0 : i32
    return %c0_i32, %c0_i32_0 : i32, i32
  }
  func.func @transform_2(%arg0: i32) -> (i32, i32) {
    %c0_i32 = arith.constant 0 : i32
    %c0_i32_0 = arith.constant 0 : i32
    %c0_i32_1 = arith.constant 0 : i32
    return %c0_i32, %c0_i32_0 : i32, i32
  }
  func.func @transform_3(%arg0: i32) -> (i32, i32) {
    %c0_i32 = arith.constant 0 : i32
    %c0_i32_0 = arith.constant 0 : i32
    %c0_i32_1 = arith.constant 0 : i32
    return %c0_i32, %c0_i32_0 : i32, i32
  }
  func.func @transform_4(%arg0: i32) -> (i32, i32) {
    %c0_i32 = arith.constant 0 : i32
    %c0_i32_0 = arith.constant 0 : i32
    %c0_i32_1 = arith.constant 0 : i32
    return %c0_i32, %c0_i32_0 : i32, i32
  }
  func.func @transform_5(%arg0: i32) -> (i32, i32) {
    %c0_i32 = arith.constant 0 : i32
    %c0_i32_0 = arith.constant 0 : i32
    %c0_i32_1 = arith.constant 0 : i32
    return %c0_i32, %c0_i32_0 : i32, i32
  }
  func.func @transform_6(%arg0: i32) -> (i32, i32) {
    %c0_i32 = arith.constant 0 : i32
    %c0_i32_0 = arith.constant 0 : i32
    %c0_i32_1 = arith.constant 0 : i32
    return %c0_i32, %c0_i32_0 : i32, i32
  }
  func.func @transform_7(%arg0: i32) -> (i32, i32) {
    %c0_i32 = arith.constant 0 : i32
    %c0_i32_0 = arith.constant 0 : i32
    %c0_i32_1 = arith.constant 0 : i32
    return %c0_i32, %c0_i32_0 : i32, i32
  }
  func.func @transform_8(%arg0: i32) -> (i32, i32) {
    %c0_i32 = arith.constant 0 : i32
    %c0_i32_0 = arith.constant 0 : i32
    %c0_i32_1 = arith.constant 0 : i32
    return %c0_i32, %c0_i32_0 : i32, i32
  }
  func.func @transform_9(%arg0: i32) -> (i32, i32) {
    %c0_i32 = arith.constant 0 : i32
    %c0_i32_0 = arith.constant 0 : i32
    return %arg0, %c0_i32 : i32, i32
  }
}

</mosaic_0001>

<bundles_post_ra>
// kernel: net_forward.1
= control target key start
LH: loop header
LB: loop body
LE: loop exit
PB: predicated region body
PF: predicated region fallthrough
CT: control target
= control target key end

     0   :  { %14 = vsyncpa [#allocation3], 0  ;;  %s1426_s0 = inlined_call_operand.vmem [shape: f32[32,32], index: 0, kind: input, shape index: {}]   ;;  %s1427_s1 = inlined_call_operand.hbm [shape: bf16[32,128], index: 1, kind: input, shape index: {}]   ;;  %s1428_s2 = inlined_call_operand.hbm [shape: f32[1,128], index: 2, kind: input, shape index: {}]   ;;  %s1429_s3 = inlined_call_operand.vmem [shape: bf16[128,128], index: 3, kind: input, shape index: {}]   ;;  %s1430_s4 = inlined_call_operand.hbm [shape: f32[1,128], index: 4, kind: input, shape index: {}]   ;;  %s1431_s5 = inlined_call_operand.vmem [shape: bf16[128,128], index: 5, kind: input, shape index: {}]   ;;  %s1432_s6 = inlined_call_operand.hbm [shape: f32[1,128], index: 6, kind: input, shape index: {}]   ;;  %s1433_s7 = inlined_call_operand.vmem [shape: bf16[128,8], index: 7, kind: input, shape index: {}]   ;;  %s1434_s8 = inlined_call_operand.hbm [shape: f32[1,8], index: 8, kind: input, shape index: {}]   ;;  %s1435_s9 = inlined_call_operand.vmem [shape: f32[32,8], index: 9, kind: output, shape index: {}]  }
   0x1   :  { %15 = vsyncpa [#allocation5], 0 }
   0x2   :  { %16 = vsyncpa [#allocation8], 0  ;;  %s1271_s30 = smov 0  }
   0x3 LB: > { %s273_s12 = sshll.u32 %s1428_s2, 4  ;;  %s823_s13 = sadd.s32 4294967295, %s1212_s30   ;;  %s1212_s30 = sphi %s1271_s30, %s22_s30   ;;  %s274_s12 = int_to_ptr.hbm [resolvable:$true] %s273_s12 }
   0x4   : > { %p825_p0 = scmp.ge.s32.totalorder %s1212_s30, 1  ;;  %p247_p1 = scmp.lt.s32.totalorder %s1212_s30, 3 }
   0x5   : > { %p1284_p2 = scmp.eq.s32.totalorder %s823_s13, 0  ;;  %s1214_s16 = smov [#allocation4]  }
   0x6   : > { %p1288_p3 = pnand %p825_p0, %p247_p1  ;;  %s275_s17 = sshll.u32 %s1214_s16, 4  ;;  %s276_s17 = int_to_ptr.vmem [resolvable:$true] %s275_s17 }
   0x7   : > { %s303_s20 = sshll.u32 %s1432_s6, 4  ;;  %s258_s23 = sshll.u32 %s1427_s1, 4  ;;  %s304_s20 = int_to_ptr.hbm [resolvable:$true] %s303_s20  ;;  %s259_s23 = int_to_ptr.hbm [resolvable:$true] %s258_s23 }
   0x8   : > { %p995_p4 = pneg %p1288_p3  ;;  %s1215_s25 = smov [#allocation7]  }
   0x9   : > { %s305_s26 = sshll.u32 %s1215_s25, 4  ;;  %s1216_s27 = smov [#allocation2]   ;;  %s306_s26 = int_to_ptr.vmem [resolvable:$true] %s305_s26 }
   0xa   : > { %p1302_p5 = pnand %p1284_p2, %p995_p4  ;;  %s260_s28 = sshll.u32 %s1216_s27, 4  ;;  %s261_s28 = int_to_ptr.vmem [resolvable:$true] %s260_s28 }
   0xb   : > { %s1217_s29 = smov 64   ;;  %s1218_s10 = smov 4  }
   0xc   : > { %1001 = dma.hbm_to_vmem [thread:$0]  (!%p1302_p5), %s274_s12, 16, %s276_s17, [#allocation5]  }
   0xd   : > { %1007 = dma.hbm_to_vmem [thread:$0]  (!%p1302_p5), %s304_s20, 16, %s306_s26, [#allocation8]  }
   0xe   : > { %998 = dma.hbm_to_vmem [thread:$0]  (!%p1302_p5), %s259_s23, 256, %s261_s28, [#allocation3], %s1217_s29, %s1217_s29, %s1218_s10  }
   0xf   : > { %s288_s18 = sshll.u32 %s1430_s4, 4  ;;  %s1219_s19 = smov [#allocation6]   ;;  %s289_s18 = int_to_ptr.hbm [resolvable:$true] %s288_s18 }
  0x10   : > { %s290_s21 = sshll.u32 %s1219_s19, 4  ;;  %s318_s17 = sshll.u32 %s1434_s8, 4  ;;  %s291_s21 = int_to_ptr.vmem [resolvable:$true] %s290_s21  ;;  %s319_s17 = int_to_ptr.hbm [resolvable:$true] %s318_s17 }
  0x11   : > { %1004 = dma.hbm_to_vmem [thread:$0]  (!%p1302_p5), %s289_s18, 16, %s291_s21, [#allocation5]  }
  0x12   : > { %s1220_s20 = smov [#allocation9]   ;;  %342 = sbr.rel (%p1288_p3) target bundleno = 617 (0x269), region = 56 }
  0x13   : > { %s320_s25 = sshll.u32 %s1220_s20, 4  ;;  %s321_s25 = int_to_ptr.vmem [resolvable:$true] %s320_s25 }
  0x14   : > { %1010 = dma.hbm_to_vmem [thread:$0]  (!%p1302_p5), %s319_s17, 16, %s321_s25, [#allocation8]  }
  0x17   : > { %1199 = dma.done.wait (%p1284_p2), [#allocation3], 256  }
  0x18   : > { %1201 = vsyncadd (%p1284_p2), [#allocation3], 4294967040 }
  0x19   : > { %1203 = dma.done.wait (%p1284_p2), [#allocation5], 32  }
  0x1a   : > { %1205 = vsyncadd (%p1284_p2), [#allocation5], 4294967264 }
  0x1b   : > { %1207 = dma.done.wait (%p1284_p2), [#allocation8], 32  }
  0x1c   : > { %1209 = vsyncadd (%p1284_p2), [#allocation8], 4294967264  ;;  %s838_s15 = sshll.u32 %s823_s13, 1  ;;  %v950_v0 = vld [vmem:[#allocation2 + $0x8] sm:$0xff]  ;;  %v949_v1 = vld [vmem:[#allocation2] sm:$0xff]  ;;  %vm435_vm0 = vcmask 261120  }
  0x1d   : > { %p400_p6 = scmp.lt.s32.totalorder %s838_s15, 3  ;;  %v958_v2 = vld [vmem:[%s1429_s3 + $0x38] sm:$0xff]  ;;  %445 = vmatpush.bf16.msra.mxu0 %v950_v0  ;;  %v957_v5 = vld [vmem:[%s1429_s3 + $0x30] sm:$0xff]  ;;  %v956_v7 = vld [vmem:[%s1429_s3 + $0x28] sm:$0xff]  ;;  %vm714_vm1 = vcmask 64512  }
  0x1e   : > { %524 = vmatpush.bf16.msra.mxu1 %v958_v2  ;;  %v955_v8 = vld [vmem:[%s1429_s3 + $0x20] sm:$0xff]  ;;  %v954_v9 = vld [vmem:[%s1429_s3 + $0x18] sm:$0xff]  ;;  %v953_v10 = vld [vmem:[%s1429_s3 + $0x10] sm:$0xff] }
  0x1f   : > { %s1440_s15 = smov (!%p400_p6, %s838_s15), 3  ;;  %v952_v11 = vld [vmem:[%s1429_s3 + $0x8] sm:$0xff]  ;;  %v951_v12 = vld [vmem:[%s1429_s3] sm:$0xff]  ;;  %v966_v13 = vld [vmem:[%s1431_s5 + $0x38] sm:$0xff] }
  0x20   : > { %s839_s23 = sshll.u32 %s1440_s15, 3  ;;  %609 = vmatpush.bf16.msra.mxu2 %v966_v13  ;;  %v965_v14 = vld [vmem:[%s1431_s5 + $0x30] sm:$0xff]  ;;  %v964_v15 = vld [vmem:[%s1431_s5 + $0x28] sm:$0xff]  ;;  %v963_v16 = vld [vmem:[%s1431_s5 + $0x20] sm:$0xff] }
  0x21   : > { %s403_s27 = scalar_lea.vmem %s1426_s0, %s839_s23  ;;  %446 = vmatpush.bf16.msra.mxu0 %v949_v1  ;;  %v1036_v18 = vld [vmem:[#allocation4] ss:$0 sm:$0xff]  ;;  %v962_v25 = vld [vmem:[%s1431_s5 + $0x18] sm:$0xff]  ;;  %v960_v27 = vld [vmem:[%s1431_s5 + $0x8] sm:$0xff]  ;;  %s409_s25 = scalar_lea.vmem %s1435_s9, %s839_s23 }
  0x22   : > { %v412_v3 = vld [vmem:[%s403_s27] sm:$0xff]  ;;  %v413_v4 = vld [vmem:[%s403_s27 + $0x8] sm:$0xff]  ;;  %525 = vmatpush.bf16.msra.mxu1 %v957_v5  ;;  %v961_v26 = vld [vmem:[%s1431_s5 + $0x10] sm:$0xff] }
  0x23   : > { %v414_v6 = vpack.c.bf16 %v413_v4, %v412_v3  ;;  %v959_v28 = vld [vmem:[%s1431_s5] sm:$0xff]  ;;  %v974_v29 = vld [vmem:[%s1433_s7 + $0x38] sm:$0xff]  ;;  %v973_v30 = vld [vmem:[%s1433_s7 + $0x30] sm:$0xff] }
  0x24   : > { %610 = vmatpush.bf16.msra.mxu2 %v965_v14  ;;  %700 = vmatpush.bf16.msra.mxu3 %v974_v29  ;;  %v1037_v32 = vld [vmem:[#allocation6] ss:$0 sm:$0xff]  ;;  %v972_v39 = vld [vmem:[%s1433_s7 + $0x28] sm:$0xff]  ;;  %v971_v40 = vld [vmem:[%s1433_s7 + $0x20] sm:$0xff] }
  0x25   : > { %850 = vmatmul.msk.bf16.vlgmr.msra.gmra.mxu0 %vm435_vm0, %v414_v6  ;;  %v970_v41 = vld [vmem:[%s1433_s7 + $0x18] sm:$0xff]  ;;  %v969_v42 = vld [vmem:[%s1433_s7 + $0x10] sm:$0xff]  ;;  %v968_v43 = vld [vmem:[%s1433_s7 + $0x8] sm:$0xff] }
  0x26   : > { %526 = vmatpush.bf16.msra.mxu1 %v956_v7  ;;  %v967_v44 = vld [vmem:[%s1433_s7] sm:$0xff]  ;;  %v1038_v45 = vld [vmem:[#allocation7] ss:$0 sm:$0xff]  ;;  %v1039_v59 = vld [vmem:[#allocation9] ss:$0 sm:$0xff] }
  0x28   : > { %611 = vmatpush.bf16.msra.mxu2 %v964_v15  ;;  %701 = vmatpush.bf16.msra.mxu3 %v973_v30 }
  0x2a   : > { %527 = vmatpush.bf16.msra.mxu1 %v955_v8 }
  0x2c   : > { %612 = vmatpush.bf16.msra.mxu2 %v963_v16  ;;  %702 = vmatpush.bf16.msra.mxu3 %v972_v39 }
  0x2e   : > { %528 = vmatpush.bf16.msra.mxu1 %v954_v9 }
  0x30   : > { %613 = vmatpush.bf16.msra.mxu2 %v962_v25  ;;  %703 = vmatpush.bf16.msra.mxu3 %v971_v40 }
  0x32   : > { %529 = vmatpush.bf16.msra.mxu1 %v953_v10 }
  0x34   : > { %614 = vmatpush.bf16.msra.mxu2 %v961_v26  ;;  %704 = vmatpush.bf16.msra.mxu3 %v970_v41 }
  0x36   : > { %530 = vmatpush.bf16.msra.mxu1 %v952_v11 }
  0x38   : > { %615 = vmatpush.bf16.msra.mxu2 %v960_v27  ;;  %705 = vmatpush.bf16.msra.mxu3 %v969_v42 }
  0x3a   : > { %531 = vmatpush.bf16.msra.mxu1 %v951_v12 }
  0x3c   : > { %616 = vmatpush.bf16.msra.mxu2 %v959_v28  ;;  %706 = vmatpush.bf16.msra.mxu3 %v968_v43 }
  0x40   : > { %707 = vmatpush.bf16.msra.mxu3 %v967_v44 }
  0xa2   : > { %v448_v17 = vpop.f32.mrf.mxu0 }
  0xa3   : > { %v449_v19 = vadd.f32 %v1036_v18, %v448_v17 }
  0xa5   : > { %v453_v22 = vmax.f32 %v449_v19, 0.0 }
  0xaa   : > { %v450_v20 = vpop.f32.mrf.mxu0 }
  0xab   : > { %v451_v21 = vadd.f32 %v1036_v18, %v450_v20 }
  0xad   : > { %v454_v23 = vmax.f32 %v451_v21, 0.0 }
  0xaf   : > { %v455_v24 = vpack.c.bf16 %v454_v23, %v453_v22 }
  0xb1   : > { %532 = vmatmul.bf16.vlgmr.msra.gmra.mxu1 %v455_v24 }
 0x12e   : > { %v533_v31 = vpop.f32.mrf.mxu1 }
 0x12f   : > { %v534_v33 = vadd.f32 %v1037_v32, %v533_v31 }
 0x131   : > { %v538_v36 = vmax.f32 %v534_v33, 0.0 }
 0x136   : > { %v535_v34 = vpop.f32.mrf.mxu1 }
 0x137   : > { %v536_v35 = vadd.f32 %v1037_v32, %v535_v34 }
 0x139   : > { %v539_v37 = vmax.f32 %v536_v35, 0.0 }
 0x13b   : > { %v540_v38 = vpack.c.bf16 %v539_v37, %v538_v36 }
 0x13d   : > { %617 = vmatmul.bf16.vlgmr.msra.gmra.mxu2 %v540_v38 }
 0x1c0   : > { %v618_v46 = vpop.f32.mrf.mxu2 }
 0x1c1   : > { %v619_v47 = vadd.f32 %v1038_v45, %v618_v46 }
 0x1c3   : > { %v623_v48 = vmul.f32 0.5, %v619_v47 }
 0x1c5   : > { %1040 = vtanh.f32 %v623_v48 }
 0x1c8   : > { %v620_v49 = vpop.f32.mrf.mxu2 }
 0x1c9   : > { %v621_v50 = vadd.f32 %v1038_v45, %v620_v49 }
 0x1cb   : > { %v624_v51 = vmul.f32 0.5, %v621_v50  ;;  %v1041_v52 = vpop.eup %1040 }
 0x1cc   : > { %v627_v53 = vadd.f32 1.0, %v1041_v52 }
 0x1cd   : > { %1042 = vtanh.f32 %v624_v51 }
 0x1ce   : > { %v629_v56 = vmul.f32 0.5, %v627_v53 }
 0x1d3   : > { %v1043_v54 = vpop.eup %1042 }
 0x1d4   : > { %v628_v55 = vadd.f32 1.0, %v1043_v54 }
 0x1d6   : > { %v630_v57 = vmul.f32 0.5, %v628_v55 }
 0x1d8   : > { %v631_v58 = vpack.c.bf16 %v630_v57, %v629_v56 }
 0x1da   : > { %708 = vmatmul.bf16.vlgmr.msra.gmra.mxu3 %v631_v58 }
 0x25d   : > { %v709_v60 = vpop.f32.mrf.mxu3 }
 0x25e   : > { %v710_v61 = vadd.f32 %v1039_v59, %v709_v60 }
 0x260   : > { %715 = vst.msk [vmem:[%s409_s25] sm:$0xff] %vm714_vm1, %v710_v61 }
 0x265   : > { %v711_v62 = vpop.f32.mrf.mxu3 }
 0x266   : > { %v712_v63 = vadd.f32 %v1039_v59, %v711_v62 }
 0x268   : > { %716 = vst.msk [vmem:[%s409_s25 + $0x8] sm:$0xff] %vm714_vm1, %v712_v63 }
 0x269 PF: > { %s22_s30 = sadd.s32 1, %s1212_s30  }
 0x26a   : > { %p19_p7 = scmp.ge.s32.totalorder %s22_s30, 4  }
 0x26c   :  { %21 = sbr.rel (!%p19_p7) target bundleno = 3 (0x3), region = 107 }
 0x271   :  { %739 = vsyncpa [#allocation3], 1 }
 0x272   :  { %741 = vsyncpa [#allocation3 + $0x1], 1 }
 0x273   :  { %742 = vsyncpa [#allocation5], 1 }
 0x274   :  { %743 = vsyncpa [#allocation8], 1 }

</bundles_post_ra>
